<compile_context>
chip_gen: v5e
topology: v5e:2x2
jax: 0.10.0
libtpu: 0.0.40
codegen_flags: <defaults>
</compile_context>

<pallas_src>
import jax
import jax.numpy as jnp
from jax.experimental import pallas as pl
from jax.experimental.pallas import tpu as pltpu

LANE = 128          # feature-dim padding granularity (vreg lane width)
SUBLANE_BF16 = 16   # batch padding granularity: bf16 native tile is (16, 128)


def _round_up(n: int, m: int) -> int:
    return ((n + m - 1) // m) * m


def _vmem_capacity_bytes() -> int:
    try:
        return int(pltpu.get_tpu_info().vmem_capacity_bytes)
    except Exception:
        return 64 << 20   # conservative fallback = v7x per-TensorCore VMEM


def mlp_kernel(x_ref, w1_ref, b1_ref, w2_ref, b2_ref, w3_ref, b3_ref, o_ref):
    """One batch tile through the whole MLP.

    Dropout is identity (eval).  BatchNorm1d has been folded into the next Linear on the
    host, so this is three MXU matmuls (bf16 in, f32 accumulation) + bias + ReLU.
    """
    x = x_ref[...]                                                      # bf16 [tile_b, in_p]

    h = jnp.dot(x, w1_ref[...], preferred_element_type=jnp.float32) + b1_ref[...]
    h = jnp.maximum(h, 0.0)

    h = jnp.dot(h.astype(jnp.bfloat16), w2_ref[...],
                preferred_element_type=jnp.float32) + b2_ref[...]
    h = jnp.maximum(h, 0.0)

    out = jnp.dot(h.astype(jnp.bfloat16), w3_ref[...],
                  preferred_element_type=jnp.float32) + b3_ref[...]
    o_ref[...] = out.astype(o_ref.dtype)


def fold_and_pad_params(p):
    """Fold eval-mode BN affine into the following Linear (in f32), zero-pad every feature
    dim to a multiple of 128 (lane-dense), cast weights to bf16, keep biases f32.

    (h * s + t) @ W == h @ (diag(s) @ W) + t @ W, so the fold is exact in eval mode.
    Padded lanes stay exactly 0 through Linear/ReLU, so real-lane numerics are unchanged.
    """
    w1, b1 = p["w1"], p["b1"]
    w2 = p["w2"] * p["s1"].reshape(-1, 1)
    b2 = p["b2"] + p["t1"] @ p["w2"]
    w3 = p["w3"] * p["s2"].reshape(-1, 1)
    b3 = p["b3"] + p["t2"] @ p["w3"]

    in_dim, h1 = w1.shape
    _, h2 = w2.shape
    _, out_dim = w3.shape
    in_p, h1_p, h2_p, out_p = (_round_up(d, LANE) for d in (in_dim, h1, h2, out_dim))

    def pad2(a, rows, cols, dtype):
        return jnp.pad(a, ((0, rows - a.shape[0]), (0, cols - a.shape[1]))).astype(dtype)

    padded = dict(
        w1=pad2(w1, in_p, h1_p, jnp.bfloat16), b1=pad2(b1, 1, h1_p, jnp.float32),
        w2=pad2(w2, h1_p, h2_p, jnp.bfloat16), b2=pad2(b2, 1, h2_p, jnp.float32),
        w3=pad2(w3, h2_p, out_p, jnp.bfloat16), b3=pad2(b3, 1, out_p, jnp.float32),
    )
    return padded, (in_p, h1_p, h2_p, out_p)


def _choose_tile_b(batch: int, max_tile_b: int):
    """Single full-batch tile when it fits (fills the MXU M dim, avoids per-step overhead
    and pointless serial grid splits on 1-TC chips); otherwise MXU-sized (256-row) tiles
    so large batches get multiple tiles and v7x's two TensorCores both get work."""
    b_pad = _round_up(batch, SUBLANE_BF16)
    if b_pad <= max_tile_b:
        return b_pad, b_pad
    tile = _round_up(max_tile_b, SUBLANE_BF16)
    return tile, _round_up(b_pad, tile)


def mlp_forward(x, params, *, max_tile_b=256, out_dtype=jnp.float32):
    """x: [B, in_dim] float32.  params: unpadded dict from make_params.

    Note: x/weights are cast to bf16 (f32 MXU accumulation); output dtype is
    configurable (pass jnp.bfloat16 to halve write-back bytes if tolerable downstream).
    """
    B, in_dim = x.shape
    out_dim = params["w3"].shape[1]

    padded, (in_p, h1_p, h2_p, out_p) = fold_and_pad_params(params)
    tile_b, b_pad = _choose_tile_b(B, max_tile_b)
    x_p = jnp.pad(x, ((0, b_pad - B), (0, in_p - in_dim))).astype(jnp.bfloat16)
    grid = (b_pad // tile_b,)

    operand_order = ("w1", "b1", "w2", "b2", "w3", "b3")
    weight_bytes = sum(int(v.size) * v.dtype.itemsize for v in padded.values())
    out_itemsize = jnp.dtype(out_dtype).itemsize

    # Advisory cost estimate (helps XLA schedule/overlap surrounding ops).
    flops = 2 * b_pad * (in_p * h1_p + h1_p * h2_p + h2_p * out_p)
    bytes_accessed = int(x_p.size) * 2 + b_pad * out_p * out_itemsize + weight_bytes
    cost = pl.CostEstimate(flops=flops, transcendentals=0, bytes_accessed=bytes_accessed)

    # TODO(synk): when resident weight bytes exceed ~50% of VMEM capacity (e.g. three bf16
    # 4096x4096 weights on v7x), switch to a K-tiled innermost 'arbitrary' reduction axis
    # with an f32 VMEM accumulator instead of whole-array weight residency.

    def run(single_buffer_weights: bool):
        if single_buffer_weights:
            # Constant index_map -> weights are never re-DMA'd across batch tiles, so one
            # VMEM buffer suffices (halves resident-weight VMEM vs default double-buffering).
            def weight_spec(shape):
                return pl.BlockSpec(shape, lambda i: (0, 0), pipeline_mode=pl.Buffered(1))
            wbuf = 1
        else:
            def weight_spec(shape):
                return pl.BlockSpec(shape, lambda i: (0, 0))
            wbuf = 2

        # x tile: default double-buffering.
        # TODO(synk): bump to pl.Buffered(3) only if the x DMA is exposed for very large in_p.
        in_specs = [pl.BlockSpec((tile_b, in_p), lambda i: (i, 0))]
        in_specs += [weight_spec(padded[k].shape) for k in operand_order]
        out_specs = pl.BlockSpec((tile_b, out_p), lambda i: (i, 0))   # lane-dense stores

        # VMEM budget: resident weights (wbuf x) + double-buffered x/out tiles + f32
        # activation intermediates + headroom; always set explicitly (v5e default scoped
        # limit is 16 MiB), capped at 85% of this chip's physical VMEM.
        io_bytes = 2 * tile_b * (in_p * 2 + out_p * out_itemsize)
        act_bytes = tile_b * (h1_p + h2_p) * 4
        vmem_need = wbuf * weight_bytes + io_bytes + act_bytes + (2 << 20)
        vmem_limit = int(min(max(vmem_need, 32 << 20), 0.85 * _vmem_capacity_bytes()))

        return pl.pallas_call(
            mlp_kernel,
            out_shape=jax.ShapeDtypeStruct((b_pad, out_p), out_dtype),
            grid_spec=pltpu.PrefetchScalarGridSpec(
                num_scalar_prefetch=0,
                grid=grid,
                in_specs=in_specs,
                out_specs=out_specs,
            ),
            compiler_params=pltpu.CompilerParams(
                dimension_semantics=("parallel",),
                vmem_limit_bytes=vmem_limit,
            ),
            cost_estimate=cost,
        )(x_p, *(padded[k] for k in operand_order))

    try:
        out_padded = run(single_buffer_weights=True)
    except Exception:
        # pipeline_mode=pl.Buffered(1) unsupported by this jax/Mosaic build: fall back to
        # default double-buffered weights (costs 2x resident-weight VMEM, same result).
        out_padded = run(single_buffer_weights=False)

    return out_padded[:B, :out_dim]


def make_params(key, in_dim, hidden, out_dim, eps=1e-5):
    """Deterministic parameter init.  Linear weights stored as [in, out] (transposed vs.
    PyTorch's [out, in]).  BatchNorm eval stats expressed as per-feature scale/shift,
    shaped (1, H); folded into the next Linear by fold_and_pad_params."""
    assert len(hidden) == 2
    h1, h2 = hidden
    ks = jax.random.split(key, 8)

    def linear(kw, kb, fan_in, fan_out):
        bound = 1.0 / jnp.sqrt(fan_in)
        w = jax.random.uniform(kw, (fan_in, fan_out), jnp.float32, -bound, bound)
        b = jax.random.uniform(kb, (1, fan_out), jnp.float32, -bound, bound)
        return w, b

    w1, b1 = linear(ks[0], ks[1], in_dim, h1)
    w2, b2 = linear(ks[2], ks[3], h1, h2)
    w3, b3 = linear(ks[4], ks[5], h2, out_dim)

    def bn_fold(kg, dim):
        gamma = 1.0 + 0.1 * jax.random.normal(kg, (1, dim), jnp.float32)
        beta = jnp.zeros((1, dim), jnp.float32)
        running_mean = jnp.zeros((1, dim), jnp.float32)
        running_var = jnp.ones((1, dim), jnp.float32)
        scale = gamma / jnp.sqrt(running_var + eps)
        shift = beta - running_mean * scale
        return scale, shift

    s1, t1 = bn_fold(ks[6], h1)
    s2, t2 = bn_fold(ks[7], h2)

    return dict(w1=w1, b1=b1, s1=s1, t1=t1,
                w2=w2, b2=b2, s2=s2, t2=t2,
                w3=w3, b3=b3)


def mlp_reference(x, p):
    """Pure-JAX f32 reference (original module semantics, BN not folded)."""
    h = jnp.maximum(x @ p["w1"] + p["b1"], 0.0) * p["s1"] + p["t1"]
    h = jnp.maximum(h @ p["w2"] + p["b2"], 0.0) * p["s2"] + p["t2"]
    return h @ p["w3"] + p["b3"]


if __name__ == "__main__":
    key = jax.random.PRNGKey(0)
    k_x, k_p = jax.random.split(key)

    B, in_dim = 64, 32
    hidden = [64, 64]
    out_dim = 16

    x = jax.random.normal(k_x, (B, in_dim), jnp.float32)
    params = make_params(k_p, in_dim, hidden, out_dim)

    out = mlp_forward(x, params)
    out = jax.block_until_ready(out)

    ref = mlp_reference(x, params)
    assert out.shape == (B, out_dim)
    # bf16 weights/activations with f32 accumulation: tolerance loosened vs pure-f32.
    assert jnp.allclose(out, ref, atol=5e-2, rtol=5e-2), "mismatch vs reference"

    print("KERNEL_OK")
</pallas_src>

<mosaic_0001>
module attributes {stable_mosaic.version = 11 : i64} {
  func.func @mlp_kernel(%arg0: i32, %arg1: memref<64x128xbf16, #tpu.memory_space<vmem>>, %arg2: memref<128x128xbf16, #tpu.memory_space<vmem>>, %arg3: memref<1x128xf32, #tpu.memory_space<vmem>>, %arg4: memref<128x128xbf16, #tpu.memory_space<vmem>>, %arg5: memref<1x128xf32, #tpu.memory_space<vmem>>, %arg6: memref<128x128xbf16, #tpu.memory_space<vmem>>, %arg7: memref<1x128xf32, #tpu.memory_space<vmem>>, %arg8: memref<64x128xf32, #tpu.memory_space<vmem>>) attributes {dimension_semantics = [#tpu.dimension_semantics<parallel>], iteration_bounds = array<i64: 1>, scalar_prefetch = 0 : i64, scratch_operands = 0 : i64, tpu.core_type = #tpu.core_type<tc>, window_params = [{transform_indices = @transform_0, window_bounds = array<i64: 64, 128>}, {pipeline_mode = #tpu.pipeline_mode<synchronous>, transform_indices = @transform_1, window_bounds = array<i64: 128, 128>}, {pipeline_mode = #tpu.pipeline_mode<synchronous>, transform_indices = @transform_2, window_bounds = array<i64: 1, 128>}, {pipeline_mode = #tpu.pipeline_mode<synchronous>, transform_indices = @transform_3, window_bounds = array<i64: 128, 128>}, {pipeline_mode = #tpu.pipeline_mode<synchronous>, transform_indices = @transform_4, window_bounds = array<i64: 1, 128>}, {pipeline_mode = #tpu.pipeline_mode<synchronous>, transform_indices = @transform_5, window_bounds = array<i64: 128, 128>}, {pipeline_mode = #tpu.pipeline_mode<synchronous>, transform_indices = @transform_6, window_bounds = array<i64: 1, 128>}, {transform_indices = @transform_7, window_bounds = array<i64: 64, 128>}]} {
    %c0 = arith.constant 0 : index
    %c0_0 = arith.constant 0 : index
    %0 = vector.load %arg1[%c0, %c0_0] : memref<64x128xbf16, #tpu.memory_space<vmem>>, vector<64x128xbf16>
    %c0_1 = arith.constant 0 : index
    %c0_2 = arith.constant 0 : index
    %1 = vector.load %arg2[%c0_1, %c0_2] : memref<128x128xbf16, #tpu.memory_space<vmem>>, vector<128x128xbf16>
    %cst = arith.constant dense<0.000000e+00> : vector<64x128xf32>
    %2 = tpu.matmul %0, %1, %cst {dimension_numbers = #tpu.dot_dimension_numbers<[1], [0], [0], [1], [0, 0, 1, 1], [], []>} : vector<64x128xbf16>, vector<128x128xbf16>, vector<64x128xf32> -> vector<64x128xf32>
    %c0_3 = arith.constant 0 : index
    %c0_4 = arith.constant 0 : index
    %3 = vector.load %arg3[%c0_3, %c0_4] : memref<1x128xf32, #tpu.memory_space<vmem>>, vector<1x128xf32>
    %4 = vector.broadcast %3 : vector<1x128xf32> to vector<64x128xf32>
    %5 = arith.addf %2, %4 : vector<64x128xf32>
    %cst_5 = arith.constant 0.000000e+00 : f32
    %6 = vector.broadcast %cst_5 : f32 to vector<64x128xf32>
    %7 = arith.maximumf %5, %6 : vector<64x128xf32>
    %8 = arith.truncf %7 : vector<64x128xf32> to vector<64x128xbf16>
    %c0_6 = arith.constant 0 : index
    %c0_7 = arith.constant 0 : index
    %9 = vector.load %arg4[%c0_6, %c0_7] : memref<128x128xbf16, #tpu.memory_space<vmem>>, vector<128x128xbf16>
    %cst_8 = arith.constant dense<0.000000e+00> : vector<64x128xf32>
    %10 = tpu.matmul %8, %9, %cst_8 {dimension_numbers = #tpu.dot_dimension_numbers<[1], [0], [0], [1], [0, 0, 1, 1], [], []>} : vector<64x128xbf16>, vector<128x128xbf16>, vector<64x128xf32> -> vector<64x128xf32>
    %c0_9 = arith.constant 0 : index
    %c0_10 = arith.constant 0 : index
    %11 = vector.load %arg5[%c0_9, %c0_10] : memref<1x128xf32, #tpu.memory_space<vmem>>, vector<1x128xf32>
    %12 = vector.broadcast %11 : vector<1x128xf32> to vector<64x128xf32>
    %13 = arith.addf %10, %12 : vector<64x128xf32>
    %cst_11 = arith.constant 0.000000e+00 : f32
    %14 = vector.broadcast %cst_11 : f32 to vector<64x128xf32>
    %15 = arith.maximumf %13, %14 : vector<64x128xf32>
    %16 = arith.truncf %15 : vector<64x128xf32> to vector<64x128xbf16>
    %c0_12 = arith.constant 0 : index
    %c0_13 = arith.constant 0 : index
    %17 = vector.load %arg6[%c0_12, %c0_13] : memref<128x128xbf16, #tpu.memory_space<vmem>>, vector<128x128xbf16>
    %cst_14 = arith.constant dense<0.000000e+00> : vector<64x128xf32>
    %18 = tpu.matmul %16, %17, %cst_14 {dimension_numbers = #tpu.dot_dimension_numbers<[1], [0], [0], [1], [0, 0, 1, 1], [], []>} : vector<64x128xbf16>, vector<128x128xbf16>, vector<64x128xf32> -> vector<64x128xf32>
    %c0_15 = arith.constant 0 : index
    %c0_16 = arith.constant 0 : index
    %19 = vector.load %arg7[%c0_15, %c0_16] : memref<1x128xf32, #tpu.memory_space<vmem>>, vector<1x128xf32>
    %20 = vector.broadcast %19 : vector<1x128xf32> to vector<64x128xf32>
    %21 = arith.addf %18, %20 : vector<64x128xf32>
    %c0_17 = arith.constant 0 : index
    %c0_18 = arith.constant 0 : index
    %22 = vector.load %arg8[%c0_17, %c0_18] : memref<64x128xf32, #tpu.memory_space<vmem>>, vector<64x128xf32>
    tpu.vector_store %arg8[%c0_17, %c0_18], %21 {strides = array<i32>} : memref<64x128xf32, #tpu.memory_space<vmem>>, vector<64x128xf32>,
    return
  }
  func.func @transform_0(%arg0: i32) -> (i32, i32) {
    %c0_i32 = arith.constant 0 : i32
    %c0_i32_0 = arith.constant 0 : i32
    return %arg0, %c0_i32 : i32, i32
  }
  func.func @transform_1(%arg0: i32) -> (i32, i32) {
    %c0_i32 = arith.constant 0 : i32
    %c0_i32_0 = arith.constant 0 : i32
    %c0_i32_1 = arith.constant 0 : i32
    return %c0_i32, %c0_i32_0 : i32, i32
  }
  func.func @transform_2(%arg0: i32) -> (i32, i32) {
    %c0_i32 = arith.constant 0 : i32
    %c0_i32_0 = arith.constant 0 : i32
    %c0_i32_1 = arith.constant 0 : i32
    return %c0_i32, %c0_i32_0 : i32, i32
  }
  func.func @transform_3(%arg0: i32) -> (i32, i32) {
    %c0_i32 = arith.constant 0 : i32
    %c0_i32_0 = arith.constant 0 : i32
    %c0_i32_1 = arith.constant 0 : i32
    return %c0_i32, %c0_i32_0 : i32, i32
  }
  func.func @transform_4(%arg0: i32) -> (i32, i32) {
    %c0_i32 = arith.constant 0 : i32
    %c0_i32_0 = arith.constant 0 : i32
    %c0_i32_1 = arith.constant 0 : i32
    return %c0_i32, %c0_i32_0 : i32, i32
  }
  func.func @transform_5(%arg0: i32) -> (i32, i32) {
    %c0_i32 = arith.constant 0 : i32
    %c0_i32_0 = arith.constant 0 : i32
    %c0_i32_1 = arith.constant 0 : i32
    return %c0_i32, %c0_i32_0 : i32, i32
  }
  func.func @transform_6(%arg0: i32) -> (i32, i32) {
    %c0_i32 = arith.constant 0 : i32
    %c0_i32_0 = arith.constant 0 : i32
    %c0_i32_1 = arith.constant 0 : i32
    return %c0_i32, %c0_i32_0 : i32, i32
  }
  func.func @transform_7(%arg0: i32) -> (i32, i32) {
    %c0_i32 = arith.constant 0 : i32
    %c0_i32_0 = arith.constant 0 : i32
    return %arg0, %c0_i32 : i32, i32
  }
}

module attributes {stable_mosaic.version = 11 : i64} {
  func.func @mlp_kernel(%arg0: i32, %arg1: memref<64x128xbf16, #tpu.memory_space<vmem>>, %arg2: memref<128x128xbf16, #tpu.memory_space<vmem>>, %arg3: memref<1x128xf32, #tpu.memory_space<vmem>>, %arg4: memref<128x128xbf16, #tpu.memory_space<vmem>>, %arg5: memref<1x128xf32, #tpu.memory_space<vmem>>, %arg6: memref<128x128xbf16, #tpu.memory_space<vmem>>, %arg7: memref<1x128xf32, #tpu.memory_space<vmem>>, %arg8: memref<64x128xf32, #tpu.memory_space<vmem>>) attributes {dimension_semantics = [#tpu.dimension_semantics<parallel>], iteration_bounds = array<i64: 1>, scalar_prefetch = 0 : i64, scratch_operands = 0 : i64, tpu.core_type = #tpu.core_type<tc>, window_params = [{transform_indices = @transform_0, window_bounds = array<i64: 64, 128>}, {pipeline_mode = #tpu.pipeline_mode<synchronous>, transform_indices = @transform_1, window_bounds = array<i64: 128, 128>}, {pipeline_mode = #tpu.pipeline_mode<synchronous>, transform_indices = @transform_2, window_bounds = array<i64: 1, 128>}, {pipeline_mode = #tpu.pipeline_mode<synchronous>, transform_indices = @transform_3, window_bounds = array<i64: 128, 128>}, {pipeline_mode = #tpu.pipeline_mode<synchronous>, transform_indices = @transform_4, window_bounds = array<i64: 1, 128>}, {pipeline_mode = #tpu.pipeline_mode<synchronous>, transform_indices = @transform_5, window_bounds = array<i64: 128, 128>}, {pipeline_mode = #tpu.pipeline_mode<synchronous>, transform_indices = @transform_6, window_bounds = array<i64: 1, 128>}, {transform_indices = @transform_7, window_bounds = array<i64: 64, 128>}]} {
    %c0 = arith.constant 0 : index
    %c0_0 = arith.constant 0 : index
    %0 = vector.load %arg1[%c0, %c0_0] : memref<64x128xbf16, #tpu.memory_space<vmem>>, vector<64x128xbf16>
    %c0_1 = arith.constant 0 : index
    %c0_2 = arith.constant 0 : index
    %1 = vector.load %arg2[%c0_1, %c0_2] : memref<128x128xbf16, #tpu.memory_space<vmem>>, vector<128x128xbf16>
    %cst = arith.constant dense<0.000000e+00> : vector<64x128xf32>
    %2 = tpu.matmul %0, %1, %cst {dimension_numbers = #tpu.dot_dimension_numbers<[1], [0], [0], [1], [0, 0, 1, 1], [], []>} : vector<64x128xbf16>, vector<128x128xbf16>, vector<64x128xf32> -> vector<64x128xf32>
    %c0_3 = arith.constant 0 : index
    %c0_4 = arith.constant 0 : index
    %3 = vector.load %arg3[%c0_3, %c0_4] : memref<1x128xf32, #tpu.memory_space<vmem>>, vector<1x128xf32>
    %4 = vector.broadcast %3 : vector<1x128xf32> to vector<64x128xf32>
    %5 = arith.addf %2, %4 : vector<64x128xf32>
    %cst_5 = arith.constant 0.000000e+00 : f32
    %6 = vector.broadcast %cst_5 : f32 to vector<64x128xf32>
    %7 = arith.maximumf %5, %6 : vector<64x128xf32>
    %8 = arith.truncf %7 : vector<64x128xf32> to vector<64x128xbf16>
    %c0_6 = arith.constant 0 : index
    %c0_7 = arith.constant 0 : index
    %9 = vector.load %arg4[%c0_6, %c0_7] : memref<128x128xbf16, #tpu.memory_space<vmem>>, vector<128x128xbf16>
    %cst_8 = arith.constant dense<0.000000e+00> : vector<64x128xf32>
    %10 = tpu.matmul %8, %9, %cst_8 {dimension_numbers = #tpu.dot_dimension_numbers<[1], [0], [0], [1], [0, 0, 1, 1], [], []>} : vector<64x128xbf16>, vector<128x128xbf16>, vector<64x128xf32> -> vector<64x128xf32>
    %c0_9 = arith.constant 0 : index
    %c0_10 = arith.constant 0 : index
    %11 = vector.load %arg5[%c0_9, %c0_10] : memref<1x128xf32, #tpu.memory_space<vmem>>, vector<1x128xf32>
    %12 = vector.broadcast %11 : vector<1x128xf32> to vector<64x128xf32>
    %13 = arith.addf %10, %12 : vector<64x128xf32>
    %cst_11 = arith.constant 0.000000e+00 : f32
    %14 = vector.broadcast %cst_11 : f32 to vector<64x128xf32>
    %15 = arith.maximumf %13, %14 : vector<64x128xf32>
    %16 = arith.truncf %15 : vector<64x128xf32> to vector<64x128xbf16>
    %c0_12 = arith.constant 0 : index
    %c0_13 = arith.constant 0 : index
    %17 = vector.load %arg6[%c0_12, %c0_13] : memref<128x128xbf16, #tpu.memory_space<vmem>>, vector<128x128xbf16>
    %cst_14 = arith.constant dense<0.000000e+00> : vector<64x128xf32>
    %18 = tpu.matmul %16, %17, %cst_14 {dimension_numbers = #tpu.dot_dimension_numbers<[1], [0], [0], [1], [0, 0, 1, 1], [], []>} : vector<64x128xbf16>, vector<128x128xbf16>, vector<64x128xf32> -> vector<64x128xf32>
    %c0_15 = arith.constant 0 : index
    %c0_16 = arith.constant 0 : index
    %19 = vector.load %arg7[%c0_15, %c0_16] : memref<1x128xf32, #tpu.memory_space<vmem>>, vector<1x128xf32>
    %20 = vector.broadcast %19 : vector<1x128xf32> to vector<64x128xf32>
    %21 = arith.addf %18, %20 : vector<64x128xf32>
    %c0_17 = arith.constant 0 : index
    %c0_18 = arith.constant 0 : index
    %22 = vector.load %arg8[%c0_17, %c0_18] : memref<64x128xf32, #tpu.memory_space<vmem>>, vector<64x128xf32>
    tpu.vector_store %arg8[%c0_17, %c0_18], %21 {strides = array<i32>} : memref<64x128xf32, #tpu.memory_space<vmem>>, vector<64x128xf32>,
    return
  }
  func.func @transform_0(%arg0: i32) -> (i32, i32) {
    %c0_i32 = arith.constant 0 : i32
    %c0_i32_0 = arith.constant 0 : i32
    return %arg0, %c0_i32 : i32, i32
  }
  func.func @transform_1(%arg0: i32) -> (i32, i32) {
    %c0_i32 = arith.constant 0 : i32
    %c0_i32_0 = arith.constant 0 : i32
    %c0_i32_1 = arith.constant 0 : i32
    return %c0_i32, %c0_i32_0 : i32, i32
  }
  func.func @transform_2(%arg0: i32) -> (i32, i32) {
    %c0_i32 = arith.constant 0 : i32
    %c0_i32_0 = arith.constant 0 : i32
    %c0_i32_1 = arith.constant 0 : i32
    return %c0_i32, %c0_i32_0 : i32, i32
  }
  func.func @transform_3(%arg0: i32) -> (i32, i32) {
    %c0_i32 = arith.constant 0 : i32
    %c0_i32_0 = arith.constant 0 : i32
    %c0_i32_1 = arith.constant 0 : i32
    return %c0_i32, %c0_i32_0 : i32, i32
  }
  func.func @transform_4(%arg0: i32) -> (i32, i32) {
    %c0_i32 = arith.constant 0 : i32
    %c0_i32_0 = arith.constant 0 : i32
    %c0_i32_1 = arith.constant 0 : i32
    return %c0_i32, %c0_i32_0 : i32, i32
  }
  func.func @transform_5(%arg0: i32) -> (i32, i32) {
    %c0_i32 = arith.constant 0 : i32
    %c0_i32_0 = arith.constant 0 : i32
    %c0_i32_1 = arith.constant 0 : i32
    return %c0_i32, %c0_i32_0 : i32, i32
  }
  func.func @transform_6(%arg0: i32) -> (i32, i32) {
    %c0_i32 = arith.constant 0 : i32
    %c0_i32_0 = arith.constant 0 : i32
    %c0_i32_1 = arith.constant 0 : i32
    return %c0_i32, %c0_i32_0 : i32, i32
  }
  func.func @transform_7(%arg0: i32) -> (i32, i32) {
    %c0_i32 = arith.constant 0 : i32
    %c0_i32_0 = arith.constant 0 : i32
    return %arg0, %c0_i32 : i32, i32
  }
}

</mosaic_0001>

<bundles_post_ra>
// kernel: tpu_custom_call.1
= control target key start
LH: loop header
LB: loop body
LE: loop exit
PB: predicated region body
PF: predicated region fallthrough
CT: control target
= control target key end

     0   :  { %12 = vsyncpa [#allocation3], 0  ;;  %s827_s0 = inlined_call_operand.hbm [shape: bf16[64,128], index: 0, kind: input, shape index: {}]   ;;  %s828_s1 = inlined_call_operand.hbm [shape: bf16[128,128], index: 1, kind: input, shape index: {}]   ;;  %s829_s2 = inlined_call_operand.vmem [shape: f32[1,128], index: 2, kind: input, shape index: {}]   ;;  %s830_s3 = inlined_call_operand.hbm [shape: bf16[128,128], index: 3, kind: input, shape index: {}]   ;;  %s831_s4 = inlined_call_operand.vmem [shape: f32[1,128], index: 4, kind: input, shape index: {}]   ;;  %s832_s5 = inlined_call_operand.hbm [shape: bf16[128,128], index: 5, kind: input, shape index: {}]   ;;  %s833_s6 = inlined_call_operand.vmem [shape: f32[1,128], index: 6, kind: input, shape index: {}]   ;;  %s834_s7 = inlined_call_operand.hbm [shape: f32[64,128], index: 7, kind: output, shape index: {}]  }
   0x1   :  { %13 = vsyncpa [#allocation6], 0 }
   0x2   :  { %14 = vsyncpa [#allocation9], 0 }
   0x3   :  { %15 = vsyncpa [#allocation4], 0  ;;  %s33_s26 = sshll.u32 %s828_s1, 4  ;;  %s754_s27 = smov [#allocation5]   ;;  %s34_s26 = int_to_ptr.hbm [resolvable:$true] %s33_s26 }
   0x4   :  { %s35_s28 = sshll.u32 %s754_s27, 4  ;;  %s20_s8 = sshll.u32 %s827_s0, 4  ;;  %s36_s28 = int_to_ptr.vmem [resolvable:$true] %s35_s28  ;;  %s21_s8 = int_to_ptr.hbm [resolvable:$true] %s20_s8 }
   0x5   :  { %s755_s9 = smov 64   ;;  %s756_s10 = smov 4  }
   0x6   :  { %41 = dma.hbm_to_vmem [thread:$0]  %s34_s26, 1024, %s36_s28, [#allocation6], %s755_s9, %s755_s9, %s756_s10  }
   0x7   :  { %s757_s11 = smov [#allocation2]   ;;  %s48_s15 = sshll.u32 %s830_s3, 4  ;;  %s49_s15 = int_to_ptr.hbm [resolvable:$true] %s48_s15 }
   0x8   :  { %s22_s12 = sshll.u32 %s757_s11, 4  ;;  %s63_s17 = sshll.u32 %s832_s5, 4  ;;  %s23_s12 = int_to_ptr.vmem [resolvable:$true] %s22_s12  ;;  %s64_s17 = int_to_ptr.hbm [resolvable:$true] %s63_s17 }
   0x9   :  { %28 = dma.hbm_to_vmem [thread:$0]  %s21_s8, 512, %s23_s12, [#allocation3], %s755_s9, %s755_s9, %s756_s10  }
   0xa   :  { %s758_s18 = smov [#allocation7]   ;;  %s759_s0 = smov [#allocation8]  }
   0xb   :  { %s50_s19 = sshll.u32 %s758_s18, 4  ;;  %s65_s20 = sshll.u32 %s759_s0, 4  ;;  %s51_s19 = int_to_ptr.vmem [resolvable:$true] %s50_s19  ;;  %s66_s20 = int_to_ptr.vmem [resolvable:$true] %s65_s20 }
   0xc   :  { %56 = dma.hbm_to_vmem [thread:$0]  %s49_s15, 1024, %s51_s19, [#allocation6], %s755_s9, %s755_s9, %s756_s10  }
   0xd   :  { %71 = dma.hbm_to_vmem [thread:$0]  %s64_s17, 1024, %s66_s20, [#allocation9], %s755_s9, %s755_s9, %s756_s10  }
   0xe   :  { %746 = dma.done.wait [#allocation3], 512  }
   0xf   :  { %747 = vsyncadd [#allocation3], 4294966784 }
  0x10   :  { %748 = dma.done.wait [#allocation6], 2048  }
  0x11   :  { %749 = vsyncadd [#allocation6], 4294965248 }
  0x12   :  { %750 = dma.done.wait [#allocation9], 1024  }
  0x13   :  { %751 = vsyncadd [#allocation9], 4294966272  ;;  %v589_v0 = vld [vmem:[#allocation5 + $0x38] sm:$0xff]  ;;  %v588_v1 = vld [vmem:[#allocation5 + $0x30] sm:$0xff]  ;;  %s451_s26 = sshll.u32 %s834_s7, 4  ;;  %s761_s27 = smov 128   ;;  %s452_s26 = int_to_ptr.hbm [resolvable:$true] %s451_s26 }
  0x14   :  { %190 = vmatpush.bf16.msra.mxu0 %v589_v0  ;;  %606 = vmatpush.bf16.msra.mxu3 %v589_v0  ;;  %v587_v2 = vld [vmem:[#allocation5 + $0x28] sm:$0xff]  ;;  %v586_v3 = vld [vmem:[#allocation5 + $0x20] sm:$0xff]  ;;  %v585_v4 = vld [vmem:[#allocation5 + $0x18] sm:$0xff]  ;;  %s762_s28 = smov 8  }
  0x15   :  { %v584_v5 = vld [vmem:[#allocation5 + $0x10] sm:$0xff]  ;;  %v583_v6 = vld [vmem:[#allocation5 + $0x8] sm:$0xff]  ;;  %v582_v7 = vld [vmem:[#allocation5] sm:$0xff] }
  0x16   :  { %v578_v8 = vld [vmem:[#allocation2] sm:$0xff]  ;;  %v579_v9 = vld [vmem:[#allocation2 + $0x8] sm:$0xff]  ;;  %v597_v10 = vld [vmem:[#allocation7 + $0x38] sm:$0xff] }
  0x17   :  { %299 = vmatpush.bf16.msra.mxu1 %v597_v10  ;;  %v596_v11 = vld [vmem:[#allocation7 + $0x30] sm:$0xff]  ;;  %v595_v12 = vld [vmem:[#allocation7 + $0x28] sm:$0xff]  ;;  %v594_v13 = vld [vmem:[#allocation7 + $0x20] sm:$0xff] }
  0x18   :  { %191 = vmatpush.bf16.msra.mxu0 %v588_v1  ;;  %607 = vmatpush.bf16.msra.mxu3 %v588_v1  ;;  %v580_v14 = vld [vmem:[#allocation2 + $0x10] sm:$0xff]  ;;  %v581_v15 = vld [vmem:[#allocation2 + $0x18] sm:$0xff]  ;;  %v591_v18 = vld [vmem:[#allocation7 + $0x8] sm:$0xff] }
  0x19   :  { %v593_v16 = vld [vmem:[#allocation7 + $0x18] sm:$0xff]  ;;  %v592_v17 = vld [vmem:[#allocation7 + $0x10] sm:$0xff]  ;;  %v590_v19 = vld [vmem:[#allocation7] sm:$0xff] }
  0x1a   :  { %v623_v21 = vld [vmem:[%s829_s2] ss:$0 sm:$0xff]  ;;  %v605_v37 = vld [vmem:[#allocation8 + $0x38] sm:$0xff]  ;;  %v604_v38 = vld [vmem:[#allocation8 + $0x30] sm:$0xff] }
  0x1b   :  { %300 = vmatpush.bf16.msra.mxu1 %v596_v11  ;;  %408 = vmatpush.bf16.msra.mxu2 %v605_v37  ;;  %v603_v41 = vld [vmem:[#allocation8 + $0x28] sm:$0xff]  ;;  %v602_v45 = vld [vmem:[#allocation8 + $0x20] sm:$0xff]  ;;  %v601_v53 = vld [vmem:[#allocation8 + $0x18] sm:$0xff] }
  0x1c   :  { %192 = vmatpush.bf16.msra.mxu0 %v587_v2  ;;  %608 = vmatpush.bf16.msra.mxu3 %v587_v2  ;;  %v600_v54 = vld [vmem:[#allocation8 + $0x10] sm:$0xff]  ;;  %v599_v55 = vld [vmem:[#allocation8 + $0x8] sm:$0xff]  ;;  %v598_v56 = vld [vmem:[#allocation8] sm:$0xff] }
  0x1d   :  { %v624_v58 = vld [vmem:[%s831_s4] ss:$0 sm:$0xff] }
  0x1f   :  { %301 = vmatpush.bf16.msra.mxu1 %v595_v12  ;;  %409 = vmatpush.bf16.msra.mxu2 %v604_v38 }
  0x20   :  { %193 = vmatpush.bf16.msra.mxu0 %v586_v3  ;;  %609 = vmatpush.bf16.msra.mxu3 %v586_v3 }
  0x23   :  { %302 = vmatpush.bf16.msra.mxu1 %v594_v13  ;;  %410 = vmatpush.bf16.msra.mxu2 %v603_v41 }
  0x24   :  { %194 = vmatpush.bf16.msra.mxu0 %v585_v4  ;;  %610 = vmatpush.bf16.msra.mxu3 %v585_v4 }
  0x27   :  { %303 = vmatpush.bf16.msra.mxu1 %v593_v16  ;;  %411 = vmatpush.bf16.msra.mxu2 %v602_v45 }
  0x28   :  { %195 = vmatpush.bf16.msra.mxu0 %v584_v5  ;;  %611 = vmatpush.bf16.msra.mxu3 %v584_v5 }
  0x2b   :  { %304 = vmatpush.bf16.msra.mxu1 %v592_v17  ;;  %412 = vmatpush.bf16.msra.mxu2 %v601_v53 }
  0x2c   :  { %196 = vmatpush.bf16.msra.mxu0 %v583_v6  ;;  %612 = vmatpush.bf16.msra.mxu3 %v583_v6 }
  0x2f   :  { %305 = vmatpush.bf16.msra.mxu1 %v591_v18  ;;  %413 = vmatpush.bf16.msra.mxu2 %v600_v54 }
  0x30   :  { %197 = vmatpush.bf16.msra.mxu0 %v582_v7  ;;  %613 = vmatpush.bf16.msra.mxu3 %v582_v7 }
  0x33   :  { %198 = vmatmul.bf16.vlgmr.msra.gmra.mxu0 %v578_v8  ;;  %203 = vmatmul.bf16.vlgmr.msra.gmra.mxu3 %v579_v9 }
  0x34   :  { %306 = vmatpush.bf16.msra.mxu1 %v590_v19  ;;  %414 = vmatpush.bf16.msra.mxu2 %v599_v55 }
  0x38   :  { %415 = vmatpush.bf16.msra.mxu2 %v598_v56 }
  0x43   :  { %208 = vmatmul.bf16.gmra.mxu3 %v580_v14 }
  0x53   :  { %213 = vmatmul.bf16.gmra.mxu3 %v581_v15 }
  0xb0   :  { %v199_v20 = vpop.f32.mrf.mxu0 }
  0xb1   :  { %v200_v23 = vadd.f32 %v623_v21, %v199_v20 }
  0xb3   :  { %v219_v26 = vmax.f32 %v200_v23, 0.0 }
  0xb6   :  { %v204_v22 = vpop.f32.mrf.mxu3 }
  0xb7   :  { %v205_v30 = vadd.f32 %v623_v21, %v204_v22  ;;  %v625_v22 = vld [vmem:[%s833_s6] ss:$0 sm:$0xff]  ;;  %s760_s6 = smov [#allocation10]  }
  0xb8   :  { %v201_v24 = vpop.f32.mrf.mxu0  ;;  %s449_s23 = sshll.u32 %s760_s6, 4  ;;  %s450_s23 = int_to_ptr.vmem [resolvable:$true] %s449_s23 }
  0xb9   :  { %v202_v25 = vadd.f32 %v623_v21, %v201_v24  ;;  %v221_v33 = vmax.f32 %v205_v30, 0.0 }
  0xbb   :  { %v220_v27 = vmax.f32 %v202_v25, 0.0 }
  0xbd   :  { %v227_v28 = vpack.c.bf16 %v220_v27, %v219_v26 }
  0xbe   :  { %v206_v29 = vpop.f32.mrf.mxu3 }
  0xbf   :  { %307 = vmatmul.bf16.vlgmr.msra.gmra.mxu1 %v227_v28  ;;  %v207_v31 = vadd.f32 %v623_v21, %v206_v29 }
  0xc1   :  { %v222_v34 = vmax.f32 %v207_v31, 0.0 }
  0xc3   :  { %v228_v35 = vpack.c.bf16 %v222_v34, %v221_v33 }
  0xc6   :  { %v209_v32 = vpop.f32.mrf.mxu3 }
  0xc7   :  { %v210_v39 = vadd.f32 %v623_v21, %v209_v32 }
  0xc9   :  { %v223_v43 = vmax.f32 %v210_v39, 0.0 }
  0xce   :  { %v211_v36 = vpop.f32.mrf.mxu3 }
  0xcf   :  { %312 = vmatmul.bf16.gmra.mxu1 %v228_v35  ;;  %v212_v40 = vadd.f32 %v623_v21, %v211_v36 }
  0xd1   :  { %v224_v44 = vmax.f32 %v212_v40, 0.0 }
  0xd3   :  { %v229_v46 = vpack.c.bf16 %v224_v44, %v223_v43 }
  0xd6   :  { %v214_v42 = vpop.f32.mrf.mxu3 }
  0xd7   :  { %v215_v48 = vadd.f32 %v623_v21, %v214_v42 }
  0xd9   :  { %v225_v50 = vmax.f32 %v215_v48, 0.0 }
  0xde   :  { %v216_v47 = vpop.f32.mrf.mxu3 }
  0xdf   :  { %317 = vmatmul.bf16.gmra.mxu1 %v229_v46  ;;  %v217_v49 = vadd.f32 %v623_v21, %v216_v47 }
  0xe1   :  { %v226_v51 = vmax.f32 %v217_v49, 0.0 }
  0xe3   :  { %v230_v52 = vpack.c.bf16 %v226_v51, %v225_v50 }
  0xef   :  { %322 = vmatmul.bf16.gmra.mxu1 %v230_v52 }
 0x13c   :  { %v308_v57 = vpop.f32.mrf.mxu1 }
 0x13d   :  { %v309_v59 = vadd.f32 %v624_v58, %v308_v57 }
 0x13f   :  { %v328_v62 = vmax.f32 %v309_v59, 0.0 }
 0x144   :  { %v310_v60 = vpop.f32.mrf.mxu1 }
 0x145   :  { %v311_v61 = vadd.f32 %v624_v58, %v310_v60 }
 0x147   :  { %v329_v63 = vmax.f32 %v311_v61, 0.0 }
 0x149   :  { %v336_v0 = vpack.c.bf16 %v329_v63, %v328_v62 }
 0x14b   :  { %416 = vmatmul.bf16.vlgmr.msra.gmra.mxu2 %v336_v0 }
 0x14c   :  { %v313_v1 = vpop.f32.mrf.mxu1 }
 0x14d   :  { %v314_v2 = vadd.f32 %v624_v58, %v313_v1 }
 0x14f   :  { %v330_v5 = vmax.f32 %v314_v2, 0.0 }
 0x154   :  { %v315_v3 = vpop.f32.mrf.mxu1 }
 0x155   :  { %v316_v4 = vadd.f32 %v624_v58, %v315_v3 }
 0x157   :  { %v331_v6 = vmax.f32 %v316_v4, 0.0 }
 0x159   :  { %v337_v7 = vpack.c.bf16 %v331_v6, %v330_v5 }
 0x15b   :  { %421 = vmatmul.bf16.gmra.mxu2 %v337_v7 }
 0x15c   :  { %v318_v8 = vpop.f32.mrf.mxu1 }
 0x15d   :  { %v319_v9 = vadd.f32 %v624_v58, %v318_v8 }
 0x15f   :  { %v332_v12 = vmax.f32 %v319_v9, 0.0 }
 0x164   :  { %v320_v10 = vpop.f32.mrf.mxu1 }
 0x165   :  { %v321_v11 = vadd.f32 %v624_v58, %v320_v10 }
 0x167   :  { %v333_v13 = vmax.f32 %v321_v11, 0.0 }
 0x169   :  { %v338_v14 = vpack.c.bf16 %v333_v13, %v332_v12 }
 0x16b   :  { %426 = vmatmul.bf16.gmra.mxu2 %v338_v14 }
 0x16c   :  { %v323_v15 = vpop.f32.mrf.mxu1 }
 0x16d   :  { %v324_v16 = vadd.f32 %v624_v58, %v323_v15 }
 0x16f   :  { %v334_v19 = vmax.f32 %v324_v16, 0.0 }
 0x174   :  { %v325_v17 = vpop.f32.mrf.mxu1 }
 0x175   :  { %v326_v18 = vadd.f32 %v624_v58, %v325_v17 }
 0x177   :  { %v335_v20 = vmax.f32 %v326_v18, 0.0 }
 0x179   :  { %v339_v21 = vpack.c.bf16 %v335_v20, %v334_v19 }
 0x17b   :  { %431 = vmatmul.bf16.gmra.mxu2 %v339_v21 }
 0x1ce   :  { %v417_v23 = vpop.f32.mrf.mxu2 }
 0x1cf   :  { %v418_v24 = vadd.f32 %v625_v22, %v417_v23 }
 0x1d1   :  { %437 = vst [vmem:[#allocation10] sm:$0xff] %v418_v24 }
 0x1d6   :  { %v419_v25 = vpop.f32.mrf.mxu2 }
 0x1d7   :  { %v420_v26 = vadd.f32 %v625_v22, %v419_v25 }
 0x1d9   :  { %438 = vst [vmem:[#allocation10 + $0x8] sm:$0xff] %v420_v26 }
 0x1de   :  { %v422_v27 = vpop.f32.mrf.mxu2 }
 0x1df   :  { %v423_v28 = vadd.f32 %v625_v22, %v422_v27 }
 0x1e1   :  { %439 = vst [vmem:[#allocation10 + $0x10] sm:$0xff] %v423_v28 }
 0x1e6   :  { %v424_v29 = vpop.f32.mrf.mxu2 }
 0x1e7   :  { %v425_v30 = vadd.f32 %v625_v22, %v424_v29 }
 0x1e9   :  { %440 = vst [vmem:[#allocation10 + $0x18] sm:$0xff] %v425_v30 }
 0x1ee   :  { %v427_v31 = vpop.f32.mrf.mxu2 }
 0x1ef   :  { %v428_v32 = vadd.f32 %v625_v22, %v427_v31 }
 0x1f1   :  { %441 = vst [vmem:[#allocation10 + $0x20] sm:$0xff] %v428_v32 }
 0x1f6   :  { %v429_v33 = vpop.f32.mrf.mxu2 }
 0x1f7   :  { %v430_v34 = vadd.f32 %v625_v22, %v429_v33 }
 0x1f9   :  { %442 = vst [vmem:[#allocation10 + $0x28] sm:$0xff] %v430_v34 }
 0x1fe   :  { %v432_v35 = vpop.f32.mrf.mxu2 }
 0x1ff   :  { %v433_v36 = vadd.f32 %v625_v22, %v432_v35 }
 0x201   :  { %443 = vst [vmem:[#allocation10 + $0x30] sm:$0xff] %v433_v36 }
 0x206   :  { %v434_v37 = vpop.f32.mrf.mxu2 }
 0x207   :  { %v435_v38 = vadd.f32 %v625_v22, %v434_v37 }
 0x209   :  { %444 = vst [vmem:[#allocation10 + $0x38] sm:$0xff] %v435_v38 }
 0x20a   :  { %457 = dma.vmem_to_hbm [thread:$0]  %s450_s23, 1024, %s452_s26, [#allocation4], %s761_s27, %s761_s27, %s762_s28  }
 0x20b   :  { %752 = dma.done.wait [#allocation4], 1024  }
 0x20c   :  { %753 = vsyncadd [#allocation4], 4294966272 }
 0x20d   :  { %462 = vsyncpa [#allocation3], 1 }
 0x20e   :  { %463 = vsyncpa [#allocation6], 1 }
 0x20f   :  { %464 = vsyncpa [#allocation9], 1 }
 0x210   :  { %465 = vsyncpa [#allocation4], 1 }

// kernel: tpu_custom_call.1
= control target key start
LH: loop header
LB: loop body
LE: loop exit
PB: predicated region body
PF: predicated region fallthrough
CT: control target
= control target key end

     0   :  { %12 = vsyncpa [#allocation3], 0  ;;  %s827_s0 = inlined_call_operand.hbm [shape: bf16[64,128], index: 0, kind: input, shape index: {}]   ;;  %s828_s1 = inlined_call_operand.hbm [shape: bf16[128,128], index: 1, kind: input, shape index: {}]   ;;  %s829_s2 = inlined_call_operand.vmem [shape: f32[1,128], index: 2, kind: input, shape index: {}]   ;;  %s830_s3 = inlined_call_operand.hbm [shape: bf16[128,128], index: 3, kind: input, shape index: {}]   ;;  %s831_s4 = inlined_call_operand.vmem [shape: f32[1,128], index: 4, kind: input, shape index: {}]   ;;  %s832_s5 = inlined_call_operand.hbm [shape: bf16[128,128], index: 5, kind: input, shape index: {}]   ;;  %s833_s6 = inlined_call_operand.vmem [shape: f32[1,128], index: 6, kind: input, shape index: {}]   ;;  %s834_s7 = inlined_call_operand.hbm [shape: f32[64,128], index: 7, kind: output, shape index: {}]  }
   0x1   :  { %13 = vsyncpa [#allocation6], 0 }
   0x2   :  { %14 = vsyncpa [#allocation9], 0 }
   0x3   :  { %15 = vsyncpa [#allocation4], 0  ;;  %s33_s26 = sshll.u32 %s828_s1, 4  ;;  %s754_s27 = smov [#allocation5]   ;;  %s34_s26 = int_to_ptr.hbm [resolvable:$true] %s33_s26 }
   0x4   :  { %s35_s28 = sshll.u32 %s754_s27, 4  ;;  %s20_s8 = sshll.u32 %s827_s0, 4  ;;  %s36_s28 = int_to_ptr.vmem [resolvable:$true] %s35_s28  ;;  %s21_s8 = int_to_ptr.hbm [resolvable:$true] %s20_s8 }
   0x5   :  { %s755_s9 = smov 64   ;;  %s756_s10 = smov 4  }
   0x6   :  { %41 = dma.hbm_to_vmem [thread:$0]  %s34_s26, 1024, %s36_s28, [#allocation6], %s755_s9, %s755_s9, %s756_s10  }
   0x7   :  { %s757_s11 = smov [#allocation2]   ;;  %s48_s15 = sshll.u32 %s830_s3, 4  ;;  %s49_s15 = int_to_ptr.hbm [resolvable:$true] %s48_s15 }
   0x8   :  { %s22_s12 = sshll.u32 %s757_s11, 4  ;;  %s63_s17 = sshll.u32 %s832_s5, 4  ;;  %s23_s12 = int_to_ptr.vmem [resolvable:$true] %s22_s12  ;;  %s64_s17 = int_to_ptr.hbm [resolvable:$true] %s63_s17 }
   0x9   :  { %28 = dma.hbm_to_vmem [thread:$0]  %s21_s8, 512, %s23_s12, [#allocation3], %s755_s9, %s755_s9, %s756_s10  }
   0xa   :  { %s758_s18 = smov [#allocation7]   ;;  %s759_s0 = smov [#allocation8]  }
   0xb   :  { %s50_s19 = sshll.u32 %s758_s18, 4  ;;  %s65_s20 = sshll.u32 %s759_s0, 4  ;;  %s51_s19 = int_to_ptr.vmem [resolvable:$true] %s50_s19  ;;  %s66_s20 = int_to_ptr.vmem [resolvable:$true] %s65_s20 }
   0xc   :  { %56 = dma.hbm_to_vmem [thread:$0]  %s49_s15, 1024, %s51_s19, [#allocation6], %s755_s9, %s755_s9, %s756_s10  }
   0xd   :  { %71 = dma.hbm_to_vmem [thread:$0]  %s64_s17, 1024, %s66_s20, [#allocation9], %s755_s9, %s755_s9, %s756_s10  }
   0xe   :  { %746 = dma.done.wait [#allocation3], 512  }
   0xf   :  { %747 = vsyncadd [#allocation3], 4294966784 }
  0x10   :  { %748 = dma.done.wait [#allocation6], 2048  }
  0x11   :  { %749 = vsyncadd [#allocation6], 4294965248 }
  0x12   :  { %750 = dma.done.wait [#allocation9], 1024  }
  0x13   :  { %751 = vsyncadd [#allocation9], 4294966272  ;;  %v589_v0 = vld [vmem:[#allocation5 + $0x38] sm:$0xff]  ;;  %v588_v1 = vld [vmem:[#allocation5 + $0x30] sm:$0xff]  ;;  %s451_s26 = sshll.u32 %s834_s7, 4  ;;  %s761_s27 = smov 128   ;;  %s452_s26 = int_to_ptr.hbm [resolvable:$true] %s451_s26 }
  0x14   :  { %190 = vmatpush.bf16.msra.mxu0 %v589_v0  ;;  %606 = vmatpush.bf16.msra.mxu3 %v589_v0  ;;  %v587_v2 = vld [vmem:[#allocation5 + $0x28] sm:$0xff]  ;;  %v586_v3 = vld [vmem:[#allocation5 + $0x20] sm:$0xff]  ;;  %v585_v4 = vld [vmem:[#allocation5 + $0x18] sm:$0xff]  ;;  %s762_s28 = smov 8  }
  0x15   :  { %v584_v5 = vld [vmem:[#allocation5 + $0x10] sm:$0xff]  ;;  %v583_v6 = vld [vmem:[#allocation5 + $0x8] sm:$0xff]  ;;  %v582_v7 = vld [vmem:[#allocation5] sm:$0xff] }
  0x16   :  { %v578_v8 = vld [vmem:[#allocation2] sm:$0xff]  ;;  %v579_v9 = vld [vmem:[#allocation2 + $0x8] sm:$0xff]  ;;  %v597_v10 = vld [vmem:[#allocation7 + $0x38] sm:$0xff] }
  0x17   :  { %299 = vmatpush.bf16.msra.mxu1 %v597_v10  ;;  %v596_v11 = vld [vmem:[#allocation7 + $0x30] sm:$0xff]  ;;  %v595_v12 = vld [vmem:[#allocation7 + $0x28] sm:$0xff]  ;;  %v594_v13 = vld [vmem:[#allocation7 + $0x20] sm:$0xff] }
  0x18   :  { %191 = vmatpush.bf16.msra.mxu0 %v588_v1  ;;  %607 = vmatpush.bf16.msra.mxu3 %v588_v1  ;;  %v580_v14 = vld [vmem:[#allocation2 + $0x10] sm:$0xff]  ;;  %v581_v15 = vld [vmem:[#allocation2 + $0x18] sm:$0xff]  ;;  %v591_v18 = vld [vmem:[#allocation7 + $0x8] sm:$0xff] }
  0x19   :  { %v593_v16 = vld [vmem:[#allocation7 + $0x18] sm:$0xff]  ;;  %v592_v17 = vld [vmem:[#allocation7 + $0x10] sm:$0xff]  ;;  %v590_v19 = vld [vmem:[#allocation7] sm:$0xff] }
  0x1a   :  { %v623_v21 = vld [vmem:[%s829_s2] ss:$0 sm:$0xff]  ;;  %v605_v37 = vld [vmem:[#allocation8 + $0x38] sm:$0xff]  ;;  %v604_v38 = vld [vmem:[#allocation8 + $0x30] sm:$0xff] }
  0x1b   :  { %300 = vmatpush.bf16.msra.mxu1 %v596_v11  ;;  %408 = vmatpush.bf16.msra.mxu2 %v605_v37  ;;  %v603_v41 = vld [vmem:[#allocation8 + $0x28] sm:$0xff]  ;;  %v602_v45 = vld [vmem:[#allocation8 + $0x20] sm:$0xff]  ;;  %v601_v53 = vld [vmem:[#allocation8 + $0x18] sm:$0xff] }
  0x1c   :  { %192 = vmatpush.bf16.msra.mxu0 %v587_v2  ;;  %608 = vmatpush.bf16.msra.mxu3 %v587_v2  ;;  %v600_v54 = vld [vmem:[#allocation8 + $0x10] sm:$0xff]  ;;  %v599_v55 = vld [vmem:[#allocation8 + $0x8] sm:$0xff]  ;;  %v598_v56 = vld [vmem:[#allocation8] sm:$0xff] }
  0x1d   :  { %v624_v58 = vld [vmem:[%s831_s4] ss:$0 sm:$0xff] }
  0x1f   :  { %301 = vmatpush.bf16.msra.mxu1 %v595_v12  ;;  %409 = vmatpush.bf16.msra.mxu2 %v604_v38 }
  0x20   :  { %193 = vmatpush.bf16.msra.mxu0 %v586_v3  ;;  %609 = vmatpush.bf16.msra.mxu3 %v586_v3 }
  0x23   :  { %302 = vmatpush.bf16.msra.mxu1 %v594_v13  ;;  %410 = vmatpush.bf16.msra.mxu2 %v603_v41 }
  0x24   :  { %194 = vmatpush.bf16.msra.mxu0 %v585_v4  ;;  %610 = vmatpush.bf16.msra.mxu3 %v585_v4 }
  0x27   :  { %303 = vmatpush.bf16.msra.mxu1 %v593_v16  ;;  %411 = vmatpush.bf16.msra.mxu2 %v602_v45 }
  0x28   :  { %195 = vmatpush.bf16.msra.mxu0 %v584_v5  ;;  %611 = vmatpush.bf16.msra.mxu3 %v584_v5 }
  0x2b   :  { %304 = vmatpush.bf16.msra.mxu1 %v592_v17  ;;  %412 = vmatpush.bf16.msra.mxu2 %v601_v53 }
  0x2c   :  { %196 = vmatpush.bf16.msra.mxu0 %v583_v6  ;;  %612 = vmatpush.bf16.msra.mxu3 %v583_v6 }
  0x2f   :  { %305 = vmatpush.bf16.msra.mxu1 %v591_v18  ;;  %413 = vmatpush.bf16.msra.mxu2 %v600_v54 }
  0x30   :  { %197 = vmatpush.bf16.msra.mxu0 %v582_v7  ;;  %613 = vmatpush.bf16.msra.mxu3 %v582_v7 }
  0x33   :  { %198 = vmatmul.bf16.vlgmr.msra.gmra.mxu0 %v578_v8  ;;  %203 = vmatmul.bf16.vlgmr.msra.gmra.mxu3 %v579_v9 }
  0x34   :  { %306 = vmatpush.bf16.msra.mxu1 %v590_v19  ;;  %414 = vmatpush.bf16.msra.mxu2 %v599_v55 }
  0x38   :  { %415 = vmatpush.bf16.msra.mxu2 %v598_v56 }
  0x43   :  { %208 = vmatmul.bf16.gmra.mxu3 %v580_v14 }
  0x53   :  { %213 = vmatmul.bf16.gmra.mxu3 %v581_v15 }
  0xb0   :  { %v199_v20 = vpop.f32.mrf.mxu0 }
  0xb1   :  { %v200_v23 = vadd.f32 %v623_v21, %v199_v20 }
  0xb3   :  { %v219_v26 = vmax.f32 %v200_v23, 0.0 }
  0xb6   :  { %v204_v22 = vpop.f32.mrf.mxu3 }
  0xb7   :  { %v205_v30 = vadd.f32 %v623_v21, %v204_v22  ;;  %v625_v22 = vld [vmem:[%s833_s6] ss:$0 sm:$0xff]  ;;  %s760_s6 = smov [#allocation10]  }
  0xb8   :  { %v201_v24 = vpop.f32.mrf.mxu0  ;;  %s449_s23 = sshll.u32 %s760_s6, 4  ;;  %s450_s23 = int_to_ptr.vmem [resolvable:$true] %s449_s23 }
  0xb9   :  { %v202_v25 = vadd.f32 %v623_v21, %v201_v24  ;;  %v221_v33 = vmax.f32 %v205_v30, 0.0 }
  0xbb   :  { %v220_v27 = vmax.f32 %v202_v25, 0.0 }
  0xbd   :  { %v227_v28 = vpack.c.bf16 %v220_v27, %v219_v26 }
  0xbe   :  { %v206_v29 = vpop.f32.mrf.mxu3 }
  0xbf   :  { %307 = vmatmul.bf16.vlgmr.msra.gmra.mxu1 %v227_v28  ;;  %v207_v31 = vadd.f32 %v623_v21, %v206_v29 }
  0xc1   :  { %v222_v34 = vmax.f32 %v207_v31, 0.0 }
  0xc3   :  { %v228_v35 = vpack.c.bf16 %v222_v34, %v221_v33 }
  0xc6   :  { %v209_v32 = vpop.f32.mrf.mxu3 }
  0xc7   :  { %v210_v39 = vadd.f32 %v623_v21, %v209_v32 }
  0xc9   :  { %v223_v43 = vmax.f32 %v210_v39, 0.0 }
  0xce   :  { %v211_v36 = vpop.f32.mrf.mxu3 }
  0xcf   :  { %312 = vmatmul.bf16.gmra.mxu1 %v228_v35  ;;  %v212_v40 = vadd.f32 %v623_v21, %v211_v36 }
  0xd1   :  { %v224_v44 = vmax.f32 %v212_v40, 0.0 }
  0xd3   :  { %v229_v46 = vpack.c.bf16 %v224_v44, %v223_v43 }
  0xd6   :  { %v214_v42 = vpop.f32.mrf.mxu3 }
  0xd7   :  { %v215_v48 = vadd.f32 %v623_v21, %v214_v42 }
  0xd9   :  { %v225_v50 = vmax.f32 %v215_v48, 0.0 }
  0xde   :  { %v216_v47 = vpop.f32.mrf.mxu3 }
  0xdf   :  { %317 = vmatmul.bf16.gmra.mxu1 %v229_v46  ;;  %v217_v49 = vadd.f32 %v623_v21, %v216_v47 }
  0xe1   :  { %v226_v51 = vmax.f32 %v217_v49, 0.0 }
  0xe3   :  { %v230_v52 = vpack.c.bf16 %v226_v51, %v225_v50 }
  0xef   :  { %322 = vmatmul.bf16.gmra.mxu1 %v230_v52 }
 0x13c   :  { %v308_v57 = vpop.f32.mrf.mxu1 }
 0x13d   :  { %v309_v59 = vadd.f32 %v624_v58, %v308_v57 }
 0x13f   :  { %v328_v62 = vmax.f32 %v309_v59, 0.0 }
 0x144   :  { %v310_v60 = vpop.f32.mrf.mxu1 }
 0x145   :  { %v311_v61 = vadd.f32 %v624_v58, %v310_v60 }
 0x147   :  { %v329_v63 = vmax.f32 %v311_v61, 0.0 }
 0x149   :  { %v336_v0 = vpack.c.bf16 %v329_v63, %v328_v62 }
 0x14b   :  { %416 = vmatmul.bf16.vlgmr.msra.gmra.mxu2 %v336_v0 }
 0x14c   :  { %v313_v1 = vpop.f32.mrf.mxu1 }
 0x14d   :  { %v314_v2 = vadd.f32 %v624_v58, %v313_v1 }
 0x14f   :  { %v330_v5 = vmax.f32 %v314_v2, 0.0 }
 0x154   :  { %v315_v3 = vpop.f32.mrf.mxu1 }
 0x155   :  { %v316_v4 = vadd.f32 %v624_v58, %v315_v3 }
 0x157   :  { %v331_v6 = vmax.f32 %v316_v4, 0.0 }
 0x159   :  { %v337_v7 = vpack.c.bf16 %v331_v6, %v330_v5 }
 0x15b   :  { %421 = vmatmul.bf16.gmra.mxu2 %v337_v7 }
 0x15c   :  { %v318_v8 = vpop.f32.mrf.mxu1 }
 0x15d   :  { %v319_v9 = vadd.f32 %v624_v58, %v318_v8 }
 0x15f   :  { %v332_v12 = vmax.f32 %v319_v9, 0.0 }
 0x164   :  { %v320_v10 = vpop.f32.mrf.mxu1 }
 0x165   :  { %v321_v11 = vadd.f32 %v624_v58, %v320_v10 }
 0x167   :  { %v333_v13 = vmax.f32 %v321_v11, 0.0 }
 0x169   :  { %v338_v14 = vpack.c.bf16 %v333_v13, %v332_v12 }
 0x16b   :  { %426 = vmatmul.bf16.gmra.mxu2 %v338_v14 }
 0x16c   :  { %v323_v15 = vpop.f32.mrf.mxu1 }
 0x16d   :  { %v324_v16 = vadd.f32 %v624_v58, %v323_v15 }
 0x16f   :  { %v334_v19 = vmax.f32 %v324_v16, 0.0 }
 0x174   :  { %v325_v17 = vpop.f32.mrf.mxu1 }
 0x175   :  { %v326_v18 = vadd.f32 %v624_v58, %v325_v17 }
 0x177   :  { %v335_v20 = vmax.f32 %v326_v18, 0.0 }
 0x179   :  { %v339_v21 = vpack.c.bf16 %v335_v20, %v334_v19 }
 0x17b   :  { %431 = vmatmul.bf16.gmra.mxu2 %v339_v21 }
 0x1ce   :  { %v417_v23 = vpop.f32.mrf.mxu2 }
 0x1cf   :  { %v418_v24 = vadd.f32 %v625_v22, %v417_v23 }
 0x1d1   :  { %437 = vst [vmem:[#allocation10] sm:$0xff] %v418_v24 }
 0x1d6   :  { %v419_v25 = vpop.f32.mrf.mxu2 }
 0x1d7   :  { %v420_v26 = vadd.f32 %v625_v22, %v419_v25 }
 0x1d9   :  { %438 = vst [vmem:[#allocation10 + $0x8] sm:$0xff] %v420_v26 }
 0x1de   :  { %v422_v27 = vpop.f32.mrf.mxu2 }
 0x1df   :  { %v423_v28 = vadd.f32 %v625_v22, %v422_v27 }
 0x1e1   :  { %439 = vst [vmem:[#allocation10 + $0x10] sm:$0xff] %v423_v28 }
 0x1e6   :  { %v424_v29 = vpop.f32.mrf.mxu2 }
 0x1e7   :  { %v425_v30 = vadd.f32 %v625_v22, %v424_v29 }
 0x1e9   :  { %440 = vst [vmem:[#allocation10 + $0x18] sm:$0xff] %v425_v30 }
 0x1ee   :  { %v427_v31 = vpop.f32.mrf.mxu2 }
 0x1ef   :  { %v428_v32 = vadd.f32 %v625_v22, %v427_v31 }
 0x1f1   :  { %441 = vst [vmem:[#allocation10 + $0x20] sm:$0xff] %v428_v32 }
 0x1f6   :  { %v429_v33 = vpop.f32.mrf.mxu2 }
 0x1f7   :  { %v430_v34 = vadd.f32 %v625_v22, %v429_v33 }
 0x1f9   :  { %442 = vst [vmem:[#allocation10 + $0x28] sm:$0xff] %v430_v34 }
 0x1fe   :  { %v432_v35 = vpop.f32.mrf.mxu2 }
 0x1ff   :  { %v433_v36 = vadd.f32 %v625_v22, %v432_v35 }
 0x201   :  { %443 = vst [vmem:[#allocation10 + $0x30] sm:$0xff] %v433_v36 }
 0x206   :  { %v434_v37 = vpop.f32.mrf.mxu2 }
 0x207   :  { %v435_v38 = vadd.f32 %v625_v22, %v434_v37 }
 0x209   :  { %444 = vst [vmem:[#allocation10 + $0x38] sm:$0xff] %v435_v38 }
 0x20a   :  { %457 = dma.vmem_to_hbm [thread:$0]  %s450_s23, 1024, %s452_s26, [#allocation4], %s761_s27, %s761_s27, %s762_s28  }
 0x20b   :  { %752 = dma.done.wait [#allocation4], 1024  }
 0x20c   :  { %753 = vsyncadd [#allocation4], 4294966272 }
 0x20d   :  { %462 = vsyncpa [#allocation3], 1 }
 0x20e   :  { %463 = vsyncpa [#allocation6], 1 }
 0x20f   :  { %464 = vsyncpa [#allocation9], 1 }
 0x210   :  { %465 = vsyncpa [#allocation4], 1 }

</bundles_post_ra>
